<compile_context>
chip_gen: v6e
topology: v6e:2x2x1
jax: 0.10.0
libtpu: 0.0.40
codegen_flags: <defaults>
</compile_context>

<pallas_src>
import jax
import jax.numpy as jnp
from jax.experimental import pallas as pl
from jax.experimental.pallas import tpu as pltpu


def _round_up(v, m):
    return ((v + m - 1) // m) * m


def centroid_classifier_kernel(xp_ref, ct_ref, ones_ref, csq_ref, wt_ref, b_ref, out_ref):
    # xp: (tm, DP)  ct: (DP, KP)  ones: (DP, KP)  csq: (1, KP)  wt: (KP, CP)  b: (1, CP)
    xp = xp_ref[...]

    # -2 * x.c  (the -2 factor is folded into ct_blk in the wrapper)
    xc = jnp.dot(xp, ct_ref[...], preferred_element_type=jnp.float32)          # (tm, KP)
    # ||x||^2 replicated across the K lanes of each packed block (MXU, no XLU reduce)
    xsq = jnp.dot(xp * xp, ones_ref[...], preferred_element_type=jnp.float32)  # (tm, KP)

    d2 = jnp.maximum(xsq + csq_ref[...] + xc, 0.0)
    dist = jnp.sqrt(d2)                                                         # EUP slot

    # Linear head on packed distances: block-diagonal W^T keeps sub-rows independent.
    logits = jnp.dot(dist, wt_ref[...], preferred_element_type=jnp.float32) + b_ref[...]
    out_ref[...] = logits.astype(out_ref.dtype)


def centroid_classifier(node_feats, centroids, lin_w, lin_b, *, tile_n=32768):
    N, D = node_feats.shape
    K, _ = centroids.shape
    C, _ = lin_w.shape

    # ---- packing factor: how many original rows share one 128-lane row --------
    pack = 128 // D if (D <= 128 and 128 % D == 0) else 1
    DP, KP, CP = D * pack, K * pack, C * pack

    # ---- constant-weight preprocessing (block-diagonal packed), done once -----
    eye = jnp.eye(pack, dtype=jnp.float32)
    ct_blk = jnp.kron(eye, (-2.0 * centroids).T.astype(jnp.float32))       # (DP, KP)
    ones_blk = jnp.kron(eye, jnp.ones((D, K), jnp.float32))                # (DP, KP)
    csq_blk = jnp.tile(jnp.sum(centroids * centroids, axis=-1), pack)[None, :]  # (1, KP)
    wt_blk = jnp.kron(eye, lin_w.T.astype(jnp.float32))                    # (KP, CP)
    b_blk = jnp.tile(lin_b, pack)[None, :]                                 # (1, CP)

    # ---- tiling over packed rows ----------------------------------------------
    m_needed = pl.cdiv(N, pack)                       # packed rows required
    tm = max(8, _round_up(max(int(tile_n), 1) // pack, 8))

    # VMEM cap: double-buffered (input + output) tiles, minor dims padded to 128.
    per_row_bytes = 2 * (_round_up(DP, 128) + _round_up(CP, 128)) * 4      # in + out, x2 buffers
    tm_vmem_cap = max(8, ((24 << 20) // per_row_bytes) // 8 * 8)
    tm = min(tm, tm_vmem_cap)

    # Keep >= ~8 grid steps for large N (v7x: 2 TensorCores share the grid).
    tm_steps_cap = max(8, _round_up(pl.cdiv(m_needed, 8), 8))
    tm = min(tm, tm_steps_cap)

    m_pad = pl.cdiv(m_needed, tm) * tm
    n_pad = m_pad * pack

    x = node_feats.astype(jnp.float32)
    if n_pad != N:
        x = jnp.pad(x, ((0, n_pad - N), (0, 0)))
    x_packed = x.reshape(m_pad, DP)                   # row-major, zero-copy when pack>1
    grid = (m_pad // tm,)

    # ---- padded-layout-aware VMEM budget ---------------------------------------
    bytes_x_tile = tm * _round_up(DP, 128) * 4
    bytes_o_tile = tm * _round_up(CP, 128) * 4
    bytes_consts = (
        _round_up(DP, 8) * _round_up(KP, 128) * 2      # ct_blk + ones_blk
        + _round_up(KP, 8) * _round_up(CP, 128)        # wt_blk
        + _round_up(1, 8) * _round_up(KP, 128)         # csq_blk
        + _round_up(1, 8) * _round_up(CP, 128)         # b_blk
    ) * 4
    working = 2 * (bytes_x_tile + bytes_o_tile) + 2 * bytes_consts
    vmem_limit = min(max(8 << 20, int(working * 1.5) + (4 << 20)), 48 << 20)

    cost = pl.CostEstimate(
        flops=2 * n_pad * K * (2 * D + C),
        transcendentals=n_pad * K,
        bytes_accessed=(n_pad * D + n_pad * C + DP * KP * 2 + KP * CP + KP + CP) * 4,
    )

    out_packed = pl.pallas_call(
        centroid_classifier_kernel,
        out_shape=jax.ShapeDtypeStruct((m_pad, CP), jnp.float32),
        grid_spec=pltpu.PrefetchScalarGridSpec(
            num_scalar_prefetch=0,
            grid=grid,
            in_specs=[
                pl.BlockSpec((tm, DP), lambda i: (i, 0)),   # streamed packed node tile
                pl.BlockSpec((DP, KP), lambda i: (0, 0)),   # resident -2*centroids (block-diag)
                pl.BlockSpec((DP, KP), lambda i: (0, 0)),   # resident ones (block-diag)
                pl.BlockSpec((1, KP), lambda i: (0, 0)),    # resident ||c||^2 (tiled)
                pl.BlockSpec((KP, CP), lambda i: (0, 0)),   # resident W^T (block-diag)
                pl.BlockSpec((1, CP), lambda i: (0, 0)),    # resident bias (tiled)
            ],
            out_specs=pl.BlockSpec((tm, CP), lambda i: (i, 0)),
        ),
        compiler_params=pltpu.CompilerParams(
            dimension_semantics=("parallel",),
            vmem_limit_bytes=int(vmem_limit),
        ),
        cost_estimate=cost,
    )(x_packed, ct_blk, ones_blk, csq_blk, wt_blk, b_blk)

    # Unpack: (m_pad, pack*C) -> (n_pad, C), row-major, zero-copy; drop padding.
    return out_packed.reshape(n_pad, C)[:N]


def reference(node_feats, centroids, lin_w, lin_b):
    diff = node_feats[:, None, :] - centroids[None, :, :]
    dist = jnp.sqrt(jnp.sum(diff * diff, axis=-1))
    return dist @ lin_w.T + lin_b


if __name__ == "__main__":
    # Shapes consistent with the module: hidden_dims=32, n_centroids=16, num_classes=8
    D, K, C = 32, 16, 8

    key = jax.random.PRNGKey(0)
    k_x, k_c, k_w, k_b, k_x2 = jax.random.split(key, 5)

    # glorot(centroids): uniform(-stdv, stdv) with stdv = sqrt(6 / (fan_in + fan_out))
    stdv = (6.0 / (K + D)) ** 0.5
    centroids = jax.random.uniform(k_c, (K, D), minval=-stdv, maxval=stdv, dtype=jnp.float32)

    # nn.Linear(n_centroids, num_classes): weight (C, K), bias (C,)
    bound = 1.0 / (K ** 0.5)
    lin_w = jax.random.uniform(k_w, (C, K), minval=-bound, maxval=bound, dtype=jnp.float32)
    lin_b = jax.random.uniform(k_b, (C,), minval=-bound, maxval=bound, dtype=jnp.float32)

    # Small demo batch (single grid step, exercises row padding within a packed tile).
    N = 8
    node_feats = jax.random.normal(k_x, (N, D), dtype=jnp.float32)
    out = jax.block_until_ready(centroid_classifier(node_feats, centroids, lin_w, lin_b))
    ref = reference(node_feats, centroids, lin_w, lin_b)
    assert out.shape == (N, C)
    assert jnp.allclose(out, ref, atol=1e-4, rtol=1e-4), "mismatch vs reference (N=8)"

    # Larger ragged batch: exercises multiple grid steps, pipelining, tail padding.
    N2 = 1000
    node_feats2 = jax.random.normal(k_x2, (N2, D), dtype=jnp.float32)
    out2 = jax.block_until_ready(
        centroid_classifier(node_feats2, centroids, lin_w, lin_b, tile_n=256)
    )
    ref2 = reference(node_feats2, centroids, lin_w, lin_b)
    assert out2.shape == (N2, C)
    assert jnp.allclose(out2, ref2, atol=1e-4, rtol=1e-4), "mismatch vs reference (N=1000)"

    print("KERNEL_OK")
</pallas_src>

<mosaic_0001>
module attributes {stable_mosaic.version = 11 : i64} {
  func.func @centroid_classifier_kernel(%arg0: i32, %arg1: memref<8x128xf32, #tpu.memory_space<vmem>>, %arg2: memref<128x64xf32, #tpu.memory_space<vmem>>, %arg3: memref<128x64xf32, #tpu.memory_space<vmem>>, %arg4: memref<1x64xf32, #tpu.memory_space<vmem>>, %arg5: memref<64x32xf32, #tpu.memory_space<vmem>>, %arg6: memref<1x32xf32, #tpu.memory_space<vmem>>, %arg7: memref<8x32xf32, #tpu.memory_space<vmem>>) attributes {dimension_semantics = [#tpu.dimension_semantics<parallel>], iteration_bounds = array<i64: 1>, scalar_prefetch = 0 : i64, scratch_operands = 0 : i64, tpu.core_type = #tpu.core_type<tc>, window_params = [{transform_indices = @transform_0, window_bounds = array<i64: 8, 128>}, {pipeline_mode = #tpu.pipeline_mode<synchronous>, transform_indices = @transform_1, window_bounds = array<i64: 128, 64>}, {pipeline_mode = #tpu.pipeline_mode<synchronous>, transform_indices = @transform_2, window_bounds = array<i64: 128, 64>}, {pipeline_mode = #tpu.pipeline_mode<synchronous>, transform_indices = @transform_3, window_bounds = array<i64: 1, 64>}, {pipeline_mode = #tpu.pipeline_mode<synchronous>, transform_indices = @transform_4, window_bounds = array<i64: 64, 32>}, {pipeline_mode = #tpu.pipeline_mode<synchronous>, transform_indices = @transform_5, window_bounds = array<i64: 1, 32>}, {transform_indices = @transform_6, window_bounds = array<i64: 8, 32>}]} {
    %c0 = arith.constant 0 : index
    %c0_0 = arith.constant 0 : index
    %0 = vector.load %arg1[%c0, %c0_0] : memref<8x128xf32, #tpu.memory_space<vmem>>, vector<8x128xf32>
    %c0_1 = arith.constant 0 : index
    %c0_2 = arith.constant 0 : index
    %1 = vector.load %arg2[%c0_1, %c0_2] : memref<128x64xf32, #tpu.memory_space<vmem>>, vector<128x64xf32>
    %cst = arith.constant dense<0.000000e+00> : vector<8x64xf32>
    %2 = tpu.matmul %0, %1, %cst {dimension_numbers = #tpu.dot_dimension_numbers<[1], [0], [0], [1], [0, 0, 1, 1], [], []>} : vector<8x128xf32>, vector<128x64xf32>, vector<8x64xf32> -> vector<8x64xf32>
    %3 = arith.mulf %0, %0 : vector<8x128xf32>
    %c0_3 = arith.constant 0 : index
    %c0_4 = arith.constant 0 : index
    %4 = vector.load %arg3[%c0_3, %c0_4] : memref<128x64xf32, #tpu.memory_space<vmem>>, vector<128x64xf32>
    %cst_5 = arith.constant dense<0.000000e+00> : vector<8x64xf32>
    %5 = tpu.matmul %3, %4, %cst_5 {dimension_numbers = #tpu.dot_dimension_numbers<[1], [0], [0], [1], [0, 0, 1, 1], [], []>} : vector<8x128xf32>, vector<128x64xf32>, vector<8x64xf32> -> vector<8x64xf32>
    %c0_6 = arith.constant 0 : index
    %c0_7 = arith.constant 0 : index
    %6 = vector.load %arg4[%c0_6, %c0_7] : memref<1x64xf32, #tpu.memory_space<vmem>>, vector<1x64xf32>
    %7 = vector.broadcast %6 : vector<1x64xf32> to vector<8x64xf32>
    %8 = arith.addf %5, %7 : vector<8x64xf32>
    %9 = arith.addf %8, %2 : vector<8x64xf32>
    %cst_8 = arith.constant 0.000000e+00 : f32
    %10 = vector.broadcast %cst_8 : f32 to vector<8x64xf32>
    %11 = arith.maximumf %9, %10 : vector<8x64xf32>
    %12 = math.sqrt %11 : vector<8x64xf32>
    %c0_9 = arith.constant 0 : index
    %c0_10 = arith.constant 0 : index
    %13 = vector.load %arg5[%c0_9, %c0_10] : memref<64x32xf32, #tpu.memory_space<vmem>>, vector<64x32xf32>
    %cst_11 = arith.constant dense<0.000000e+00> : vector<8x32xf32>
    %14 = tpu.matmul %12, %13, %cst_11 {dimension_numbers = #tpu.dot_dimension_numbers<[1], [0], [0], [1], [0, 0, 1, 1], [], []>} : vector<8x64xf32>, vector<64x32xf32>, vector<8x32xf32> -> vector<8x32xf32>
    %c0_12 = arith.constant 0 : index
    %c0_13 = arith.constant 0 : index
    %15 = vector.load %arg6[%c0_12, %c0_13] : memref<1x32xf32, #tpu.memory_space<vmem>>, vector<1x32xf32>
    %16 = vector.broadcast %15 : vector<1x32xf32> to vector<8x32xf32>
    %17 = arith.addf %14, %16 : vector<8x32xf32>
    %c0_14 = arith.constant 0 : index
    %c0_15 = arith.constant 0 : index
    %18 = vector.load %arg7[%c0_14, %c0_15] : memref<8x32xf32, #tpu.memory_space<vmem>>, vector<8x32xf32>
    tpu.vector_store %arg7[%c0_14, %c0_15], %17 {strides = array<i32>} : memref<8x32xf32, #tpu.memory_space<vmem>>, vector<8x32xf32>,
    return
  }
  func.func @transform_0(%arg0: i32) -> (i32, i32) {
    %c0_i32 = arith.constant 0 : i32
    %c0_i32_0 = arith.constant 0 : i32
    return %arg0, %c0_i32 : i32, i32
  }
  func.func @transform_1(%arg0: i32) -> (i32, i32) {
    %c0_i32 = arith.constant 0 : i32
    %c0_i32_0 = arith.constant 0 : i32
    %c0_i32_1 = arith.constant 0 : i32
    return %c0_i32, %c0_i32_0 : i32, i32
  }
  func.func @transform_2(%arg0: i32) -> (i32, i32) {
    %c0_i32 = arith.constant 0 : i32
    %c0_i32_0 = arith.constant 0 : i32
    %c0_i32_1 = arith.constant 0 : i32
    return %c0_i32, %c0_i32_0 : i32, i32
  }
  func.func @transform_3(%arg0: i32) -> (i32, i32) {
    %c0_i32 = arith.constant 0 : i32
    %c0_i32_0 = arith.constant 0 : i32
    %c0_i32_1 = arith.constant 0 : i32
    return %c0_i32, %c0_i32_0 : i32, i32
  }
  func.func @transform_4(%arg0: i32) -> (i32, i32) {
    %c0_i32 = arith.constant 0 : i32
    %c0_i32_0 = arith.constant 0 : i32
    %c0_i32_1 = arith.constant 0 : i32
    return %c0_i32, %c0_i32_0 : i32, i32
  }
  func.func @transform_5(%arg0: i32) -> (i32, i32) {
    %c0_i32 = arith.constant 0 : i32
    %c0_i32_0 = arith.constant 0 : i32
    %c0_i32_1 = arith.constant 0 : i32
    return %c0_i32, %c0_i32_0 : i32, i32
  }
  func.func @transform_6(%arg0: i32) -> (i32, i32) {
    %c0_i32 = arith.constant 0 : i32
    %c0_i32_0 = arith.constant 0 : i32
    return %arg0, %c0_i32 : i32, i32
  }
}

</mosaic_0001>

<bundles_post_ra>
// kernel: tpu_custom_call.1
= control target key start
LH: loop header
LB: loop body
LE: loop exit
PB: predicated region body
PF: predicated region fallthrough
CT: control target
= control target key end

     0   :  { %v481_v2 = vmov 0.0   ;;  %s694_s0 = inlined_call_operand.vmem [shape: f32[8,128], index: 0, kind: input, shape index: {}]   ;;  %s695_s1 = inlined_call_operand.vmem [shape: f32[128,64], index: 1, kind: input, shape index: {}]   ;;  %s696_s2 = inlined_call_operand.vmem [shape: f32[128,64], index: 2, kind: input, shape index: {}]   ;;  %s697_s3 = inlined_call_operand.vmem [shape: f32[1,64], index: 3, kind: input, shape index: {}]   ;;  %s698_s4 = inlined_call_operand.vmem [shape: f32[64,32], index: 4, kind: input, shape index: {}]   ;;  %s699_s5 = inlined_call_operand.vmem [shape: f32[1,32], index: 5, kind: input, shape index: {}]   ;;  %s700_s6 = inlined_call_operand.hbm [shape: f32[8,32], index: 6, kind: output, shape index: {}]  }
   0x1   :  { %v40_v0 = vld [vmem:[%s695_s1 + $0x78] sm:$0xff]  ;;  %365 = vmatprep.subr.mxu0 %v481_v2  ;;  %400 = vmatprep.subr.mxu1 %v481_v2  ;;  %v39_v3 = vld [vmem:[%s695_s1 + $0x70] sm:$0xff]  ;;  %v38_v5 = vld [vmem:[%s695_s1 + $0x68] sm:$0xff] }
   0x2   :  { %v127_v1 = vld [vmem:[%s696_s2 + $0x78] sm:$0xff]  ;;  %v126_v4 = vld [vmem:[%s696_s2 + $0x70] sm:$0xff]  ;;  %366 = vmatpush3.msra.mxu0 %v40_v0  ;;  %v125_v6 = vld [vmem:[%s696_s2 + $0x68] sm:$0xff] }
   0x3   :  { %401 = vmatpush3.msra.mxu1 %v127_v1  ;;  %367 = vmatprep.subr.mxu0 %v481_v2  ;;  %v37_v7 = vld [vmem:[%s695_s1 + $0x60] sm:$0xff]  ;;  %v36_v9 = vld [vmem:[%s695_s1 + $0x58] sm:$0xff]  ;;  %v35_v11 = vld [vmem:[%s695_s1 + $0x50] sm:$0xff] }
   0x4   :  { %402 = vmatprep.subr.mxu1 %v481_v2  ;;  %368 = vmatpush3.msra.mxu0 %v39_v3  ;;  %v124_v8 = vld [vmem:[%s696_s2 + $0x60] sm:$0xff]  ;;  %v123_v10 = vld [vmem:[%s696_s2 + $0x58] sm:$0xff]  ;;  %v122_v12 = vld [vmem:[%s696_s2 + $0x50] sm:$0xff] }
   0x5   :  { %403 = vmatpush3.msra.mxu1 %v126_v4  ;;  %369 = vmatprep.subr.mxu0 %v481_v2  ;;  %v34_v13 = vld [vmem:[%s695_s1 + $0x48] sm:$0xff] }
   0x6   :  { %404 = vmatprep.subr.mxu1 %v481_v2  ;;  %370 = vmatpush3.msra.mxu0 %v38_v5  ;;  %v121_v14 = vld [vmem:[%s696_s2 + $0x48] sm:$0xff] }
   0x7   :  { %405 = vmatpush3.msra.mxu1 %v125_v6  ;;  %371 = vmatprep.subr.mxu0 %v481_v2 }
   0x8   :  { %406 = vmatprep.subr.mxu1 %v481_v2  ;;  %372 = vmatpush3.msra.mxu0 %v37_v7 }
   0x9   :  { %407 = vmatpush3.msra.mxu1 %v124_v8  ;;  %373 = vmatprep.subr.mxu0 %v481_v2 }
   0xa   :  { %408 = vmatprep.subr.mxu1 %v481_v2  ;;  %374 = vmatpush3.msra.mxu0 %v36_v9 }
   0xb   :  { %409 = vmatpush3.msra.mxu1 %v123_v10  ;;  %375 = vmatprep.subr.mxu0 %v481_v2 }
   0xc   :  { %410 = vmatprep.subr.mxu1 %v481_v2 }
   0xd   :  { %11 = vsyncpa [#allocation3], 0  ;;  %376 = vmatpush3.msra.mxu0 %v35_v11  ;;  %411 = vmatpush3.msra.mxu1 %v122_v12  ;;  %v33_v15 = vld [vmem:[%s695_s1 + $0x40] sm:$0xff]  ;;  %v32_v17 = vld [vmem:[%s695_s1 + $0x38] sm:$0xff]  ;;  %vm482_vm0 = vmmov 0   ;;  %vm229_vm2 = vcmask 523264  }
   0xe   :  { %377 = vmatprep.subr.mxu0 %v481_v2  ;;  %412 = vmatprep.subr.mxu1 %v481_v2  ;;  %v120_v16 = vld [vmem:[%s696_s2 + $0x40] sm:$0xff]  ;;  %v119_v18 = vld [vmem:[%s696_s2 + $0x38] sm:$0xff]  ;;  %v31_v19 = vld [vmem:[%s695_s1 + $0x30] sm:$0xff]  ;;  %vm303_vm4 = vcmask 261120  }
   0xf   :  { %378 = vmatpush3.msra.mxu0 %v34_v13  ;;  %413 = vmatpush3.msra.mxu1 %v121_v14  ;;  %v118_v20 = vld [vmem:[%s696_s2 + $0x30] sm:$0xff]  ;;  %v30_v21 = vld [vmem:[%s695_s1 + $0x28] sm:$0xff]  ;;  %v29_v23 = vld [vmem:[%s695_s1 + $0x20] sm:$0xff] }
  0x10   :  { %379 = vmatprep.subr.mxu0 %v481_v2  ;;  %414 = vmatprep.subr.mxu1 %v481_v2  ;;  %v117_v22 = vld [vmem:[%s696_s2 + $0x28] sm:$0xff]  ;;  %v116_v24 = vld [vmem:[%s696_s2 + $0x20] sm:$0xff]  ;;  %v28_v25 = vld [vmem:[%s695_s1 + $0x18] sm:$0xff] }
  0x11   :  { %380 = vmatpush3.msra.mxu0 %v33_v15  ;;  %415 = vmatpush3.msra.mxu1 %v120_v16  ;;  %v115_v26 = vld [vmem:[%s696_s2 + $0x18] sm:$0xff]  ;;  %v27_v27 = vld [vmem:[%s695_s1 + $0x10] sm:$0xff]  ;;  %v26_v29 = vld [vmem:[%s695_s1 + $0x8] sm:$0xff] }
  0x12   :  { %381 = vmatprep.subr.mxu0 %v481_v2  ;;  %416 = vmatprep.subr.mxu1 %v481_v2  ;;  %v114_v28 = vld [vmem:[%s696_s2 + $0x10] sm:$0xff]  ;;  %v113_v30 = vld [vmem:[%s696_s2 + $0x8] sm:$0xff]  ;;  %v24_v31 = vld [vmem:[%s694_s0] sm:$0xff] }
  0x13   :  { %382 = vmatpush3.msra.mxu0 %v32_v17  ;;  %417 = vmatpush3.msra.mxu1 %v119_v18  ;;  %v25_v32 = vld [vmem:[%s695_s1] sm:$0xff]  ;;  %v111_v34 = vmul.f32 %v24_v31, %v24_v31  ;;  %v221_v35 = vld [vmem:[%s698_s4 + $0x38] sm:$0xff]  ;;  %v220_v36 = vld [vmem:[%s698_s4 + $0x30] sm:$0xff] }
  0x14   :  { %383 = vmatprep.subr.mxu0 %v481_v2  ;;  %418 = vmatprep.subr.mxu1 %v481_v2  ;;  %v112_v33 = vld [vmem:[%s696_s2] sm:$0xff]  ;;  %v219_v37 = vld [vmem:[%s698_s4 + $0x28] sm:$0xff]  ;;  %v217_v39 = vld [vmem:[%s698_s4 + $0x18] sm:$0xff] }
  0x15   :  { %384 = vmatpush3.msra.mxu0 %v31_v19  ;;  %419 = vmatpush3.msra.mxu1 %v118_v20  ;;  %v218_v38 = vld [vmem:[%s698_s4 + $0x20] sm:$0xff]  ;;  %v216_v40 = vld [vmem:[%s698_s4 + $0x10] sm:$0xff]  ;;  %v215_v41 = vld [vmem:[%s698_s4 + $0x8] sm:$0xff] }
  0x16   :  { %385 = vmatprep.subr.mxu0 %v481_v2  ;;  %420 = vmatprep.subr.mxu1 %v481_v2  ;;  %v214_v42 = vld [vmem:[%s698_s4] sm:$0xff] }
  0x17   :  { %386 = vmatpush3.msra.mxu0 %v30_v21  ;;  %421 = vmatpush3.msra.mxu1 %v117_v22  ;;  %v319_v43 = vld [vmem:[%s697_s3] ss:$0 sm:$0xff]  ;;  %s483_s3 = smov [#allocation2]  }
  0x18   :  { %387 = vmatprep.subr.mxu0 %v481_v2  ;;  %422 = vmatprep.subr.mxu1 %v481_v2  ;;  %v320_v56 = vld [vmem:[%s699_s5] ss:$0 sm:$0xff]  ;;  %s311_s7 = sshll.u32 %s483_s3, 4  ;;  %s312_s7 = int_to_ptr.vmem [resolvable:$true] %s311_s7 }
  0x19   :  { %388 = vmatpush3.msra.mxu0 %v29_v23  ;;  %423 = vmatpush3.msra.mxu1 %v116_v24  ;;  %s459_s8 = scalar_lea.vmem %s312_s7, 128  ;;  %p464_p1 = scmp.lt.s32.totalorder %s312_s7, %s312_s7 }
  0x1a   :  { %389 = vmatprep.subr.mxu0 %v481_v2  ;;  %424 = vmatprep.subr.mxu1 %v481_v2  ;;  %p460_p0 = scmp.ne.s32.totalorder %s312_s7, %s459_s8  ;;  %p465_p2 = scmp.lt.s32.totalorder %s459_s8, %s459_s8 }
  0x1b   :  { %390 = vmatpush3.msra.mxu0 %v28_v25  ;;  %425 = vmatpush3.msra.mxu1 %v115_v26 }
  0x1c   :  { %391 = vmatprep.subr.mxu0 %v481_v2  ;;  %426 = vmatprep.subr.mxu1 %v481_v2  ;;  %p466_p3 = por %p465_p2, %p464_p1 }
  0x1d   :  { %392 = vmatpush3.msra.mxu0 %v27_v27  ;;  %427 = vmatpush3.msra.mxu1 %v114_v28 }
  0x1e   :  { %393 = vmatprep.subr.mxu0 %v481_v2  ;;  %428 = vmatprep.subr.mxu1 %v481_v2  ;;  %p467_p4 = pnand %p466_p3, %p460_p0 }
  0x1f   :  { %394 = vmatpush3.msra.mxu0 %v26_v29  ;;  %429 = vmatpush3.msra.mxu1 %v113_v30 }
  0x20   :  { %395 = vmatprep.subr.mxu0 %v481_v2  ;;  %430 = vmatprep.subr.mxu1 %v481_v2 }
  0x21   :  { %396 = vmatpush3.msra.mxu0 %v25_v32  ;;  %397 = vmatprep.mubr.msk.f32.mxu0 %vm482_vm0, %v481_v2 }
  0x22   :  { %431 = vmatpush3.msra.mxu1 %v112_v33  ;;  %432 = vmatprep.mubr.msk.f32.mxu1 %vm482_vm0, %v481_v2 }
  0x23   :  { %398 = vmatmul.mubr.f32.vlgmr.msra.gmra.mxu0 %v24_v31  ;;  %433 = vmatmul.mubr.f32.vlgmr.msra.gmra.mxu1 %v111_v34 }
  0x24   :  { %435 = vmatprep.subr.mxu0 %v481_v2  ;;  %451 = vmatprep.mubr.msk.f32.mxu0 %vm482_vm0, %v481_v2 }
  0x25   :  { %436 = vmatpush3.msra.mxu0 %v221_v35 }
  0x26   :  { %437 = vmatprep.subr.mxu0 %v481_v2 }
  0x27   :  { %438 = vmatpush3.msra.mxu0 %v220_v36 }
  0x28   :  { %439 = vmatprep.subr.mxu0 %v481_v2 }
  0x29   :  { %440 = vmatpush3.msra.mxu0 %v219_v37 }
  0x2a   :  { %441 = vmatprep.subr.mxu0 %v481_v2 }
  0x2b   :  { %442 = vmatpush3.msra.mxu0 %v218_v38 }
  0x2c   :  { %443 = vmatprep.subr.mxu0 %v481_v2 }
  0x2d   :  { %444 = vmatpush3.msra.mxu0 %v217_v39 }
  0x2e   :  { %445 = vmatprep.subr.mxu0 %v481_v2 }
  0x2f   :  { %446 = vmatpush3.msra.mxu0 %v216_v40 }
  0x30   :  { %447 = vmatprep.subr.mxu0 %v481_v2 }
  0x31   :  { %448 = vmatpush3.msra.mxu0 %v215_v41 }
  0x32   :  { %449 = vmatprep.subr.mxu0 %v481_v2 }
  0x33   :  { %450 = vmatpush3.msra.mxu0 %v214_v42 }
  0xe3   :  { %v107_v44 = vpop.f32.mrf.mxu0  ;;  %v201_v45 = vpop.f32.mrf.mxu1 }
  0xe4   :  { %v202_v46 = vadd.f32 %v319_v43, %v201_v45 }
  0xe5   :  { %v399_v47 = vpop.f32.mrf.mxu0  ;;  %v434_v48 = vpop.f32.mrf.mxu1 }
  0xe6   :  { %v205_v49 = vadd.f32 %v202_v46, %v107_v44 }
  0xe8   :  { %v206_v50 = vmax.f32 %v205_v49, 0.0 }
  0xea   :  { %457 = vrsqrt.f32 %v206_v50  ;;  %vm209_vm1 = vcmp.eq.f32.partialorder %v206_v50, inf  ;;  %v212_v53 = vand.u32 2147483648, %v206_v50  ;;  %vm211_vm3 = vcmp.eq.f32.partialorder %v206_v50, 0.0 }
  0xf7   :  { %v458_v51 = vpop.eup %457 }
  0xf8   :  { %v208_v52 = vmul.f32 %v458_v51, %v206_v50 }
  0xfa   :  { %v210_v54 = vsel %vm209_vm1, %v206_v50, %v208_v52 }
  0xfb   :  { %v213_v55 = vsel %vm211_vm3, %v212_v53, %v210_v54 }
  0xfc   :  { %452 = vmatmul.mubr.msk.f32.vlgmr.msra.gmra.mxu0 %vm229_vm2, %v213_v55 }
 0x1bc   :  { %v299_v57 = vpop.f32.mrf.mxu0 }
 0x1bd   :  { %v300_v58 = vadd.f32 %v320_v56, %v299_v57 }
 0x1be   :  { %v453_v59 = vpop.f32.mrf.mxu0 }
 0x1bf   :  { %304 = vst.msk [vmem:[#allocation2] sm:$0xff] %vm303_vm4, %v300_v58 }
 0x1c0   :  { %470 = shalt.err (!%p467_p4)
}
 0x1c1   :  { %314 = dma.vmem_to_hbm [thread:$0]  %s312_s7, 128, %s700_s6, [#allocation3]  }
 0x1c2   :  { %479 = dma.done.wait [#allocation3], 128  }
 0x1c3   :  { %480 = vsyncadd [#allocation3], 4294967168 }
 0x1c4   :  { %318 = vsyncpa [#allocation3], 1 }

</bundles_post_ra>
